<compile_context>
chip_gen: v6e
topology: v6e:2x2x1
jax: 0.10.0
libtpu: 0.0.40
codegen_flags: <defaults>
</compile_context>

<pallas_src>
import jax
import jax.numpy as jnp
from jax.experimental import pallas as pl
from jax.experimental.pallas import tpu as pltpu


def gcn_fused_kernel(x_ref, m_ref, b_ref, o_ref):
    # x_ref: (bm, V*C)      bf16 flattened activations (rows = batch*seq)
    # m_ref: (V*C, bn)      bf16 column slice of the combined diffusion+conv op
    # b_ref: (1, bn)        f32 bias strip matching the output column tile
    # o_ref: (bm, bn)
    y = jnp.dot(x_ref[...], m_ref[...], preferred_element_type=jnp.float32)
    o_ref[...] = (y + b_ref[...]).astype(o_ref.dtype)


def _num_tensorcores():
    """Best-effort TensorCores-per-chip (1 on v5e/v6e, 2 on v7x)."""
    try:
        info = pltpu.get_tpu_info()
    except Exception:
        return 1
    for attr in ("num_tensorcores", "tensorcores_per_chip", "num_cores",
                 "cores_per_chip"):
        v = getattr(info, attr, None)
        if isinstance(v, int) and v > 0:
            return v
    return 1


def _largest_tile(total, align, max_tile):
    """Largest divisor of `total` that is a multiple of `align` and <= max_tile."""
    if total <= max_tile:
        return total
    best = align
    t = align
    while t <= max_tile:
        if total % t == 0:
            best = t
        t += align
    return best


def gcn_forward(x_nchw, A, conv_weight, conv_bias, order=2):
    """x_nchw: (N, C, V, L); A: (V, V); conv_weight: (c_out, (order+1)*C, 1, 1).

    Returns (N, c_out, V, L), matching the PyTorch module's NCHW output
    (dropout treated as identity / inference mode).
    """
    assert order == 2, "kernel is specialized to order=2 (GWNet default)"
    N, C, V, L = x_nchw.shape
    c_out = conv_weight.shape[0]

    # --- host-side (pure JAX / XLA) precompute of the combined operator -------
    #   M[(v,c),(w,o)] = delta_{vw} W0[c,o] + A[v,w] W1[c,o] + (A@A)[v,w] W2[c,o]
    # torch.cat order is [x, A(x), A(A(x))] -> weight split along input channels.
    w = conv_weight.reshape(c_out, (order + 1) * C).astype(jnp.float32)
    W0 = w[:, 0:C].T            # (C, c_out)  acts on x
    W1 = w[:, C:2 * C].T        # (C, c_out)  acts on A(x)
    W2 = w[:, 2 * C:3 * C].T    # (C, c_out)  acts on A^2(x)
    A32 = A.astype(jnp.float32)
    A2 = A32 @ A32
    eye = jnp.eye(V, dtype=jnp.float32)
    M = (jnp.einsum('vw,co->vcwo', eye, W0)
         + jnp.einsum('vw,co->vcwo', A32, W1)
         + jnp.einsum('vw,co->vcwo', A2, W2)).reshape(V * C, V * c_out)
    # bias broadcasts over nodes: flat output index is w*c_out + o -> tile over V.
    b_row = jnp.tile(conv_bias.astype(jnp.float32), V).reshape(1, V * c_out)

    # Flatten activations so the kernel is a single lane-dense matmul.
    #   x_flat[n*L + l, v*C + c] = x[n, c, v, l]
    # TODO(synk): in a full GWNetMix forward, keep activations in this
    # channels-last (rows, V*C) layout across consecutive blocks instead of
    # paying an NCHW<->NLVC transpose (a full HBM pass) around every gcn call.
    x_flat = jnp.transpose(x_nchw, (0, 3, 2, 1)).reshape(N * L, V * C)

    # bf16 MXU operands, f32 accumulation in the kernel.
    x_bf = x_flat.astype(jnp.bfloat16)
    m_bf = M.astype(jnp.bfloat16)

    rows, k_dim, n_cols = N * L, V * C, V * c_out

    # Row split only when it can pay for itself: a big enough LHS and a chip
    # that actually has a second TensorCore.  Otherwise a single grid step
    # (the split is pure per-step pipeline overhead on single-TC v5e/v6e).
    if rows >= 512 and rows % 16 == 0 and _num_tensorcores() >= 2:
        grid_m, bm = 2, rows // 2
    else:
        grid_m, bm = 1, rows

    # Output-node axis tiling: minor dim stays a multiple of 128 (unmasked vst)
    # and the per-step M slice stays VMEM-friendly.  At toy sizes this is one
    # full-width 512-wide tile (grid_n == 1).
    bn = _largest_tile(n_cols, 128, 4096) if n_cols % 128 == 0 else n_cols
    grid_n = n_cols // bn

    out_flat = pl.pallas_call(
        gcn_fused_kernel,
        out_shape=jax.ShapeDtypeStruct((rows, n_cols), x_nchw.dtype),
        grid_spec=pltpu.PrefetchScalarGridSpec(
            num_scalar_prefetch=0,
            grid=(grid_m, grid_n),
            in_specs=[
                pl.BlockSpec((bm, k_dim), lambda i, j: (i, 0)),
                pl.BlockSpec((k_dim, bn), lambda i, j: (0, j)),
                pl.BlockSpec((1, bn), lambda i, j: (0, j)),
            ],
            out_specs=pl.BlockSpec((bm, bn), lambda i, j: (i, j)),
        ),
        compiler_params=pltpu.CompilerParams(
            dimension_semantics=("parallel", "parallel"),
            # Explicit scoped-VMEM budget: safe on v5e/v6e/v7x and prevents the
            # 16 MiB (v5e) default from silently capping larger tiles.
            vmem_limit_bytes=32 * 1024 * 1024,
        ),
    )(x_bf, m_bf, b_row)

    # TODO(synk): F.dropout(training=True) has no deterministic equivalent here;
    # the module is evaluated in inference mode (dropout = identity).

    # (N*L, V*c_out) -> (N, L, V, c_out) -> NCHW (N, c_out, V, L)
    return jnp.transpose(out_flat.reshape(N, L, V, c_out), (0, 3, 2, 1))


def gcn_reference(x_nchw, A, conv_weight, conv_bias, order=2):
    """Pure-JAX f32 reference mirroring the PyTorch module exactly."""
    outs = [x_nchw]
    x = x_nchw
    for _ in range(order):
        x = jnp.einsum('ncvl,vw->ncwl', x, A)
        outs.append(x)
    h = jnp.concatenate(outs, axis=1)                       # (N, 3C, V, L)
    w = conv_weight[:, :, 0, 0]                             # (c_out, 3C)
    y = jnp.einsum('nkvl,ok->novl', h, w) + conv_bias[None, :, None, None]
    return y


if __name__ == "__main__":
    # Small shapes consistent with GWNet's gcn: batch=2, c_in=4, nodes=16, seq=8.
    N, C_IN, V, L = 2, 4, 16, 8
    C_OUT, ORDER = 32, 2

    key = jax.random.PRNGKey(0)
    kx, ka, kw, kb = jax.random.split(key, 4)

    x = jax.random.normal(kx, (N, C_IN, V, L), dtype=jnp.float32)
    # row-normalized random adjacency (typical GWNet support matrix)
    a_raw = jax.random.uniform(ka, (V, V), dtype=jnp.float32)
    A = a_raw / jnp.sum(a_raw, axis=1, keepdims=True)
    # Conv2d((order+1)*c_in, c_out, kernel_size=(1,1), bias=True) parameters
    conv_weight = 0.1 * jax.random.normal(kw, (C_OUT, (ORDER + 1) * C_IN, 1, 1),
                                          dtype=jnp.float32)
    conv_bias = 0.1 * jax.random.normal(kb, (C_OUT,), dtype=jnp.float32)

    y = gcn_forward(x, A, conv_weight, conv_bias, order=ORDER)
    y = jax.block_until_ready(y)

    y_ref = gcn_reference(x, A, conv_weight, conv_bias, order=ORDER)
    assert y.shape == (N, C_OUT, V, L), y.shape
    # Tolerance loosened vs. the pure-f32 version: MXU operands are bf16
    # (f32 accumulation), so inputs lose mantissa bits.
    assert jnp.allclose(y, y_ref, atol=3e-2, rtol=3e-2), \
        float(jnp.max(jnp.abs(y - y_ref)))

    print("KERNEL_OK")
</pallas_src>

<mosaic_0001>
module attributes {stable_mosaic.version = 11 : i64} {
  func.func @gcn_fused_kernel(%arg0: i32, %arg1: i32, %arg2: memref<16x64xbf16, #tpu.memory_space<vmem>>, %arg3: memref<64x512xbf16, #tpu.memory_space<vmem>>, %arg4: memref<1x512xf32, #tpu.memory_space<vmem>>, %arg5: memref<16x512xf32, #tpu.memory_space<vmem>>) attributes {dimension_semantics = [#tpu.dimension_semantics<parallel>, #tpu.dimension_semantics<parallel>], iteration_bounds = array<i64: 1, 1>, scalar_prefetch = 0 : i64, scratch_operands = 0 : i64, tpu.core_type = #tpu.core_type<tc>, window_params = [{transform_indices = @transform_0, window_bounds = array<i64: 16, 64>}, {transform_indices = @transform_1, window_bounds = array<i64: 64, 512>}, {transform_indices = @transform_2, window_bounds = array<i64: 1, 512>}, {transform_indices = @transform_3, window_bounds = array<i64: 16, 512>}]} {
    %c0 = arith.constant 0 : index
    %c0_0 = arith.constant 0 : index
    %0 = vector.load %arg2[%c0, %c0_0] : memref<16x64xbf16, #tpu.memory_space<vmem>>, vector<16x64xbf16>
    %c0_1 = arith.constant 0 : index
    %c0_2 = arith.constant 0 : index
    %1 = vector.load %arg3[%c0_1, %c0_2] : memref<64x512xbf16, #tpu.memory_space<vmem>>, vector<64x512xbf16>
    %cst = arith.constant dense<0.000000e+00> : vector<16x512xf32>
    %2 = tpu.matmul %0, %1, %cst {dimension_numbers = #tpu.dot_dimension_numbers<[1], [0], [0], [1], [0, 0, 1, 1], [], []>} : vector<16x64xbf16>, vector<64x512xbf16>, vector<16x512xf32> -> vector<16x512xf32>
    %c0_3 = arith.constant 0 : index
    %c0_4 = arith.constant 0 : index
    %3 = vector.load %arg4[%c0_3, %c0_4] : memref<1x512xf32, #tpu.memory_space<vmem>>, vector<1x512xf32>
    %4 = vector.broadcast %3 : vector<1x512xf32> to vector<16x512xf32>
    %5 = arith.addf %2, %4 : vector<16x512xf32>
    %c0_5 = arith.constant 0 : index
    %c0_6 = arith.constant 0 : index
    %6 = vector.load %arg5[%c0_5, %c0_6] : memref<16x512xf32, #tpu.memory_space<vmem>>, vector<16x512xf32>
    tpu.vector_store %arg5[%c0_5, %c0_6], %5 {strides = array<i32>} : memref<16x512xf32, #tpu.memory_space<vmem>>, vector<16x512xf32>,
    return
  }
  func.func @transform_0(%arg0: i32, %arg1: i32) -> (i32, i32) {
    %c0_i32 = arith.constant 0 : i32
    %c0_i32_0 = arith.constant 0 : i32
    return %arg0, %c0_i32 : i32, i32
  }
  func.func @transform_1(%arg0: i32, %arg1: i32) -> (i32, i32) {
    %c0_i32 = arith.constant 0 : i32
    %c0_i32_0 = arith.constant 0 : i32
    return %c0_i32, %arg1 : i32, i32
  }
  func.func @transform_2(%arg0: i32, %arg1: i32) -> (i32, i32) {
    %c0_i32 = arith.constant 0 : i32
    %c0_i32_0 = arith.constant 0 : i32
    return %c0_i32, %arg1 : i32, i32
  }
  func.func @transform_3(%arg0: i32, %arg1: i32) -> (i32, i32) {
    %c0_i32 = arith.constant 0 : i32
    return %arg0, %arg1 : i32, i32
  }
}

</mosaic_0001>

<bundles_post_ra>
// kernel: tpu_custom_call.1
= control target key start
LH: loop header
LB: loop body
LE: loop exit
PB: predicated region body
PF: predicated region fallthrough
CT: control target
= control target key end

     0   :  { %8 = vsyncpa [#allocation3], 0  ;;  %s480_s0 = inlined_call_operand.hbm [shape: bf16[16,64], index: 0, kind: input, shape index: {}]   ;;  %s481_s1 = inlined_call_operand.hbm [shape: bf16[64,512], index: 1, kind: input, shape index: {}]   ;;  %s482_s2 = inlined_call_operand.hbm [shape: f32[1,512], index: 2, kind: input, shape index: {}]   ;;  %s483_s3 = inlined_call_operand.hbm [shape: f32[16,512], index: 3, kind: output, shape index: {}]  }
   0x1   :  { %9 = vsyncpa [#allocation6], 0 }
   0x2   :  { %10 = vsyncpa [#allocation4], 0  ;;  %s437_s12 = smov [#allocation5]  }
   0x3   :  { %s28_s13 = sshll.u32 %s437_s12, 4  ;;  %s29_s13 = int_to_ptr.vmem [resolvable:$true] %s28_s13 }
   0x4   :  { %s359_s14 = scalar_lea.vmem %s29_s13, 2048  ;;  %p364_p1 = scmp.lt.s32.totalorder %s29_s13, %s29_s13 }
   0x5   :  { %p360_p0 = scmp.ne.s32.totalorder %s29_s13, %s359_s14  ;;  %p365_p2 = scmp.lt.s32.totalorder %s359_s14, %s359_s14 }
   0x7   :  { %p366_p3 = por %p365_p2, %p364_p1 }
   0x9   :  { %p367_p4 = pnand %p366_p3, %p360_p0 }
   0xb   :  { %370 = shalt.err (!%p367_p4)
}
   0xc   :  { %s438_s15 = smov 256   ;;  %s439_s16 = smov 16  }
   0xd   :  { %34 = dma.hbm_to_vmem [thread:$0]  %s481_s1, 2048, %s29_s13, [#allocation6], %s438_s15, %s438_s15, %s439_s16  }
   0xe   :  { %s440_s19 = smov [#allocation2]  }
   0xf   :  { %s16_s20 = sshll.u32 %s440_s19, 4  ;;  %s17_s20 = int_to_ptr.vmem [resolvable:$true] %s16_s20 }
  0x10   :  { %s379_s21 = scalar_lea.vmem %s17_s20, 128  ;;  %p384_p6 = scmp.lt.s32.totalorder %s17_s20, %s17_s20 }
  0x11   :  { %p380_p5 = scmp.ne.s32.totalorder %s17_s20, %s379_s21  ;;  %p385_p7 = scmp.lt.s32.totalorder %s379_s21, %s379_s21 }
  0x13   :  { %p386_p8 = por %p385_p7, %p384_p6 }
  0x15   :  { %p387_p9 = pnand %p386_p8, %p380_p5 }
  0x17   :  { %390 = shalt.err (!%p387_p9)
}
  0x18   :  { %s441_s22 = smov 64   ;;  %s442_s23 = smov 4  }
  0x19   :  { %22 = dma.hbm_to_vmem [thread:$0]  %s480_s0, 128, %s17_s20, [#allocation3], %s441_s22, %s441_s22, %s442_s23  }
  0x1a   :  { %s443_s26 = smov [#allocation7]  }
  0x1b   :  { %s41_s27 = sshll.u32 %s443_s26, 4  ;;  %s42_s27 = int_to_ptr.vmem [resolvable:$true] %s41_s27 }
  0x1c   :  { %s399_s1 = scalar_lea.vmem %s42_s27, 64  ;;  %p404_p11 = scmp.lt.s32.totalorder %s42_s27, %s42_s27 }
  0x1d   :  { %p400_p10 = scmp.ne.s32.totalorder %s42_s27, %s399_s1  ;;  %p405_p12 = scmp.lt.s32.totalorder %s399_s1, %s399_s1 }
  0x1f   :  { %p406_p13 = por %p405_p12, %p404_p11 }
  0x21   :  { %p407_p0 = pnand %p406_p13, %p400_p10 }
  0x23   :  { %410 = shalt.err (!%p407_p0)
}
  0x24   :  { %44 = dma.hbm_to_vmem [thread:$0]  %s482_s2, 64, %s42_s27, [#allocation6]  }
  0x25   :  { %431 = dma.done.wait [#allocation3], 128  }
  0x26   :  { %432 = vsyncadd [#allocation3], 4294967168 }
  0x27   :  { %433 = dma.done.wait [#allocation6], 2112  }
  0x28   :  { %434 = vsyncadd [#allocation6], 4294965184  ;;  %v444_v0 = vmov 0   ;;  %v326_v1 = vld [vmem:[#allocation5 + $0x64] ss:$16 sps:$4 sm:$0xff]   ;;  %v350_v17 = vld [vmem:[#allocation2] sm:$0xff]   ;;  %v75_v18 = vlaneseq }
  0x29   :  { %216 = vmatprep.mubr.bf16.mxu0 %v444_v0  ;;  %259 = vmatprep.mubr.bf16.mxu1 %v444_v0  ;;  %v328_v2 = vld [vmem:[#allocation5 + $0x6c] ss:$16 sps:$4 sm:$0xff]   ;;  %v330_v3 = vld [vmem:[#allocation5 + $0x60] ss:$16 sps:$4 sm:$0xff]   ;;  %v331_v4 = vld [vmem:[#allocation5 + $0x68] ss:$16 sps:$4 sm:$0xff]  }
  0x2a   :  { %192 = vmatprep.subr.bf16.mxu0 %v326_v1  ;;  %235 = vmatprep.subr.bf16.mxu1 %v328_v2  ;;  %v332_v5 = vld [vmem:[#allocation5 + $0x44] ss:$16 sps:$4 sm:$0xff]   ;;  %v334_v6 = vld [vmem:[#allocation5 + $0x4c] ss:$16 sps:$4 sm:$0xff]   ;;  %v336_v7 = vld [vmem:[#allocation5 + $0x40] ss:$16 sps:$4 sm:$0xff]  }
  0x2b   :  { %193 = vmatpush1.bf16.msra.mxu0 %v330_v3  ;;  %236 = vmatpush1.bf16.msra.mxu1 %v331_v4  ;;  %v337_v8 = vld [vmem:[#allocation5 + $0x48] ss:$16 sps:$4 sm:$0xff]   ;;  %v338_v9 = vld [vmem:[#allocation5 + $0x24] ss:$16 sps:$4 sm:$0xff]   ;;  %v340_v10 = vld [vmem:[#allocation5 + $0x2c] ss:$16 sps:$4 sm:$0xff]  }
  0x2c   :  { %194 = vmatprep.subr.bf16.mxu0 %v332_v5  ;;  %237 = vmatprep.subr.bf16.mxu1 %v334_v6  ;;  %v342_v11 = vld [vmem:[#allocation5 + $0x20] ss:$16 sps:$4 sm:$0xff]   ;;  %v343_v12 = vld [vmem:[#allocation5 + $0x28] ss:$16 sps:$4 sm:$0xff]   ;;  %v344_v13 = vld [vmem:[#allocation5 + $0x4] ss:$16 sps:$4 sm:$0xff]  }
  0x2d   :  { %v346_v14 = vld [vmem:[#allocation5 + $0xc] ss:$16 sps:$4 sm:$0xff]   ;;  %v348_v15 = vld [vmem:[#allocation5] ss:$16 sps:$4 sm:$0xff]   ;;  %v349_v16 = vld [vmem:[#allocation5 + $0x8] ss:$16 sps:$4 sm:$0xff]  }
  0x2e   :  { %vm180_vm0 = vcmask 523264   ;;  %v76_v19 = vshrl.u32 %v75_v18, 7  ;;  %v73_v22 = vld [vmem:[#allocation7] sm:$0xf]  ;;  %s445_s0 = smov [#allocation8]  }
  0x2f   :  { %195 = vmatpush1.bf16.msra.mxu0 %v336_v7  ;;  %238 = vmatpush1.bf16.msra.mxu1 %v337_v8  ;;  %s283_s2 = sshll.u32 %s445_s0, 4  ;;  %s284_s2 = int_to_ptr.vmem [resolvable:$true] %s283_s2 }
  0x30   :  { %196 = vmatprep.subr.bf16.mxu0 %v338_v9  ;;  %239 = vmatprep.subr.bf16.mxu1 %v340_v10  ;;  %v77_v20 = vsub.s32 0, %v76_v19  ;;  %v85_v21 = vsub.s32 2, %v76_v19  ;;  %v81_v23 = vsub.s32 1, %v76_v19  ;;  %v89_v24 = vsub.s32 3, %v76_v19  ;;  %s411_s30 = scalar_lea.vmem %s284_s2, 1024  ;;  %p416_p2 = scmp.lt.s32.totalorder %s284_s2, %s284_s2 }
  0x31   :  { %p412_p1 = scmp.ne.s32.totalorder %s284_s2, %s411_s30  ;;  %p417_p3 = scmp.lt.s32.totalorder %s411_s30, %s411_s30 }
  0x32   :  { %v78_v25 = vrot.slane %v73_v22, %v77_v20  ;;  %v86_v26 = vrot.slane %v73_v22, %v85_v21  ;;  %v82_v27 = vrot.slane %v73_v22, %v81_v23  ;;  %v90_v28 = vrot.slane %v73_v22, %v89_v24 }
  0x33   :  { %197 = vmatpush1.bf16.msra.mxu0 %v342_v11  ;;  %240 = vmatpush1.bf16.msra.mxu1 %v343_v12  ;;  %p418_p4 = por %p417_p3, %p416_p2 }
  0x34   :  { %198 = vmatprep.subr.bf16.mxu0 %v344_v13  ;;  %241 = vmatprep.subr.bf16.mxu1 %v346_v14 }
  0x35   :  { %p419_p5 = pnand %p418_p4, %p412_p1 }
  0x37   :  { %199 = vmatpush1.bf16.msra.mxu0 %v348_v15  ;;  %242 = vmatpush1.bf16.msra.mxu1 %v349_v16 }
  0x3a   :  { %313 = vmatmul.mubr.msk.bf16.vlgmr.msra.gmra.mxu0 %vm180_vm0, %v350_v17  ;;  %314 = vmatmul.mubr.msk.bf16.vlgmr.msra.gmra.mxu1 %vm180_vm0, %v350_v17 }
  0xfa   :  { %v218_v29 = vpop.f32.mrf.mxu0  ;;  %v261_v30 = vpop.f32.mrf.mxu1 }
  0xfb   :  { %v219_v31 = vadd.f32 %v218_v29, %v78_v25  ;;  %v262_v32 = vadd.f32 %v261_v30, %v86_v26 }
  0xfc   :  { %v220_v33 = vpop.f32.mrf.mxu0  ;;  %v263_v34 = vpop.f32.mrf.mxu1 }
  0xfd   :  { %270 = vst [vmem:[#allocation8] sm:$0xff] %v219_v31  ;;  %272 = vst [vmem:[#allocation8 + $0x10] sm:$0xff] %v262_v32  ;;  %v221_v35 = vadd.f32 %v220_v33, %v82_v27  ;;  %v264_v36 = vadd.f32 %v263_v34, %v90_v28 }
  0xfe   :  { %v222_v37 = vpop.f32.mrf.mxu0  ;;  %v265_v38 = vpop.f32.mrf.mxu1 }
  0xff   :  { %271 = vst [vmem:[#allocation8 + $0x8] sm:$0xff] %v221_v35  ;;  %273 = vst [vmem:[#allocation8 + $0x18] sm:$0xff] %v264_v36  ;;  %v223_v39 = vadd.f32 %v222_v37, %v78_v25  ;;  %v266_v40 = vadd.f32 %v265_v38, %v86_v26 }
 0x100   :  { %v224_v41 = vpop.f32.mrf.mxu0  ;;  %v267_v42 = vpop.f32.mrf.mxu1 }
 0x101   :  { %274 = vst [vmem:[#allocation8 + $0x20] sm:$0xff] %v223_v39  ;;  %276 = vst [vmem:[#allocation8 + $0x30] sm:$0xff] %v266_v40  ;;  %v225_v43 = vadd.f32 %v224_v41, %v82_v27  ;;  %v268_v44 = vadd.f32 %v267_v42, %v90_v28 }
 0x103   :  { %275 = vst [vmem:[#allocation8 + $0x28] sm:$0xff] %v225_v43  ;;  %277 = vst [vmem:[#allocation8 + $0x38] sm:$0xff] %v268_v44 }
 0x104   :  { %422 = shalt.err (!%p419_p5)
}
 0x105   :  { %s446_s4 = smov 512   ;;  %s447_s5 = smov 32  }
 0x106   :  { %289 = dma.vmem_to_hbm [thread:$0]  %s284_s2, 1024, %s483_s3, [#allocation4], %s446_s4, %s446_s4, %s447_s5  }
 0x107   :  { %435 = dma.done.wait [#allocation4], 1024  }
 0x108   :  { %436 = vsyncadd [#allocation4], 4294966272 }
 0x109   :  { %293 = vsyncpa [#allocation3], 1 }
 0x10a   :  { %294 = vsyncpa [#allocation6], 1 }
 0x10b   :  { %295 = vsyncpa [#allocation4], 1 }

</bundles_post_ra>
